<compile_context>
chip_gen: v7x
topology: tpu7x:2x2x1
jax: 0.10.0
libtpu: 0.0.40
codegen_flags: <defaults>
</compile_context>

<pallas_src>
import math

import jax
import jax.numpy as jnp
from jax.experimental import pallas as pl
from jax.experimental.pallas import tpu as pltpu


# ----------------------------------------------------------------------------
# VMEM budget / tiling helpers
# ----------------------------------------------------------------------------
def _vmem_limit_bytes():
    """Scoped VMEM limit derived from the actual chip (v7x: 64 MiB physical)."""
    try:
        cap = int(pltpu.get_tpu_info().vmem_capacity_bytes)
    except Exception:
        cap = 64 * 1024 * 1024          # conservative fallback (v7x per-core VMEM)
    return min(cap // 2, 64 * 1024 * 1024)


def _choose_row_tile(N, C, H, W, itemsize, min_rows, budget_bytes):
    """Rows per block: multiple of min_rows (or full H), sized so the largest input
    block (C * rows * W * itemsize bytes) stays within budget_bytes.  When N == 1,
    keep >= 2 grid steps along H so both v7x TensorCores get work."""
    if H <= min_rows:
        return H
    rows = budget_bytes // max(1, C * W * itemsize)
    if rows >= H:
        rt = H
    else:
        rt = max(min_rows, (rows // min_rows) * min_rows)
    if N == 1 and rt >= H:
        half = (H + 1) // 2
        rt = min(H, max(min_rows, ((half + min_rows - 1) // min_rows) * min_rows))
    return rt


# ----------------------------------------------------------------------------
# Kernel 1: per-pixel CE loss (ignore_index aware), loss map only
# ----------------------------------------------------------------------------
def _make_ce_kernel(ignore_label: int, H: int, row_tile: int):
    ragged = (H % row_tile) != 0

    def kernel(score_ref, target_ref, loss_ref):
        s = score_ref[...].astype(jnp.float32)          # (C, TH, W)
        t = target_ref[...]                             # (TH, W) int32

        if ragged:                                      # keep exp/log finite on the
            row = (pl.program_id(1) * row_tile          # padded rows of the last block
                   + jax.lax.broadcasted_iota(jnp.int32, t.shape, 0))
            s = jnp.where((row < H)[None], s, 0.0)

        m = jnp.max(s, axis=0)                          # (TH, W)  VPU max over planes
        e = jnp.exp(s - m[None])                        # (C, TH, W)
        sum_e = jnp.sum(e, axis=0)                      # (TH, W)

        is_ignore = t == ignore_label
        tmp_t = jnp.where(is_ignore, 0, t)              # clamp ignore -> class 0
        cls = jax.lax.broadcasted_iota(jnp.int32, s.shape, 0)
        s_t = jnp.sum(jnp.where(cls == tmp_t[None], s, 0.0), axis=0)

        # loss = -log softmax_prob(target); 0 on ignore pixels (excluded downstream
        # because the OHEM loss-threshold is clamped >= 0).
        loss_ref[...] = jnp.where(is_ignore, 0.0, m + jnp.log(sum_e) - s_t)

    return kernel


def _per_pixel_ce(score, target, ignore_label, row_tile, vmem_limit):
    N, C, H, W = score.shape
    grid_h = pl.cdiv(H, row_tile)
    return pl.pallas_call(
        _make_ce_kernel(ignore_label, H, row_tile),
        out_shape=jax.ShapeDtypeStruct((N, H, W), jnp.float32),
        grid=(N, grid_h),
        in_specs=[
            pl.BlockSpec((None, C, row_tile, W), lambda n, h: (n, 0, h, 0)),
            pl.BlockSpec((None, row_tile, W), lambda n, h: (n, h, 0)),
        ],
        out_specs=pl.BlockSpec((None, row_tile, W), lambda n, h: (n, h, 0)),
        compiler_params=pltpu.CompilerParams(
            dimension_semantics=("parallel", "parallel"),
            vmem_limit_bytes=vmem_limit),
    )(score, target)


# ----------------------------------------------------------------------------
# Kernel 2: loss-space thresholded partial sums + int32 counts
# ----------------------------------------------------------------------------
def _make_reduce_kernel(H: int, row_tile: int):
    ragged = (H % row_tile) != 0

    def kernel(thr_ref, loss_ref, sum_ref, cnt_ref):
        thr = thr_ref[0]                                # SMEM scalar (loss threshold)
        loss = loss_ref[...]                            # (TH, W)
        sel = loss > thr                                # ignore pixels have loss == 0 <= thr
        if ragged:
            row = (pl.program_id(1) * row_tile
                   + jax.lax.broadcasted_iota(jnp.int32, loss.shape, 0))
            sel = sel & (row < H)
        s = jnp.sum(jnp.where(sel, loss, 0.0))
        c = jnp.sum(sel.astype(jnp.int32))
        # Broadcast-fill the (8,128) partial block (no iota/corner-mask work);
        # the XLA finish just reads element [0, 0] of each block.
        sum_ref[...] = jnp.broadcast_to(s, sum_ref.shape)
        cnt_ref[...] = jnp.broadcast_to(c, cnt_ref.shape)

    return kernel


def _masked_sum_count(loss, loss_thr, H, row_tile, vmem_limit):
    N, _, W = loss.shape
    grid_h = pl.cdiv(H, row_tile)
    thr = jnp.reshape(loss_thr, (1,)).astype(jnp.float32)

    psum, pcnt = pl.pallas_call(
        _make_reduce_kernel(H, row_tile),
        out_shape=(jax.ShapeDtypeStruct((N * grid_h, 8, 128), jnp.float32),
                   jax.ShapeDtypeStruct((N * grid_h, 8, 128), jnp.int32)),
        grid=(N, grid_h),
        in_specs=[
            pl.BlockSpec(memory_space=pltpu.MemorySpace.SMEM),   # scalar threshold
            pl.BlockSpec((None, row_tile, W), lambda n, h: (n, h, 0)),
        ],
        out_specs=[
            pl.BlockSpec((None, 8, 128), lambda n, h: (n * grid_h + h, 0, 0)),
            pl.BlockSpec((None, 8, 128), lambda n, h: (n * grid_h + h, 0, 0)),
        ],
        compiler_params=pltpu.CompilerParams(
            dimension_semantics=("parallel", "parallel"),
            vmem_limit_bytes=vmem_limit),
    )(thr, loss)
    return jnp.sum(psum[:, 0, 0]), jnp.sum(pcnt[:, 0, 0])


# ----------------------------------------------------------------------------
# Module wrapper (mirrors the PyTorch OhemCrossEntropy forward semantics)
# ----------------------------------------------------------------------------
class OhemCrossEntropyPallas:
    def __init__(self, ignore_label=255, thres=0.7, min_kept=100000, weight=None,
                 cast_logits_to_bf16=False):
        # TODO(synk): per-class `weight` for CrossEntropyLoss not implemented
        # (default usage is weight=None).
        assert weight is None, "class weights not supported in this kernel"
        self.thresh = float(thres)
        self.min_kept = max(1, int(min_kept))
        self.ignore_label = int(ignore_label)
        # Optional: halve kernel-1's dominant HBM read (big win on v5e/v6e);
        # the kernel upcasts to f32 internally, so exp/log precision is unchanged.
        self.cast_logits_to_bf16 = bool(cast_logits_to_bf16)
        # Loss-space image of the prob threshold: pred < thres  <=>  loss > -log(thres)
        self._neg_log_thres = (float("inf") if self.thresh <= 0.0
                               else -math.log(min(self.thresh, 1.0)))

    # ---- shared kernel-1 launch --------------------------------------------------
    def _loss_map(self, score, target):
        if self.cast_logits_to_bf16 and score.dtype == jnp.float32:
            score = score.astype(jnp.bfloat16)
        N, C, H, W = score.shape
        itemsize = jnp.dtype(score.dtype).itemsize
        min_rows = 16 if itemsize < 4 else 8            # bf16 min tile is (16, 128)
        vmem_limit = _vmem_limit_bytes()
        row_tile = _choose_row_tile(N, C, H, W, itemsize, min_rows,
                                    budget_bytes=vmem_limit // 12)
        return _per_pixel_ce(score, target, self.ignore_label, row_tile, vmem_limit)

    def _ce_forward(self, score, target):
        return self._loss_map(score, target.astype(jnp.int32))

    def _ohem_forward(self, score, target, **kwargs):
        N, C, H, W = score.shape
        target = target.astype(jnp.int32)
        loss = self._loss_map(score, target)             # (N, H, W) f32, 0 on ignore

        # --- k-th value selection in loss space (pred == exp(-loss) is monotone) --
        loss_flat = loss.reshape(-1)
        valid = target.reshape(-1) != self.ignore_label
        n_valid = jnp.sum(valid.astype(jnp.int32))
        P = loss_flat.shape[0]
        k = min(self.min_kept + 1, P)
        masked = jnp.where(valid, loss_flat, -jnp.inf)
        if k * 8 >= P:                                   # tiny problem: exact top-k
            top_losses, _ = jax.lax.top_k(masked, k)
        else:                                            # TPU-native approximate top-k
            top_losses, _ = jax.lax.approx_max_k(masked, k, recall_target=0.95)
        idx = jnp.clip(jnp.minimum(jnp.int32(self.min_kept), n_valid - 1), 0, k - 1)
        kth_loss = top_losses[idx]                       # loss of the k-th smallest pred
        # threshold = max(min_value_prob, thres)  ->  loss_thr = min(kth_loss, -log(thres))
        # clamped >= 0 so ignore pixels (loss == 0) are never selected.
        loss_thr = jnp.maximum(
            jnp.minimum(kth_loss, jnp.float32(self._neg_log_thres)), jnp.float32(0.0))

        # --- thresholded mean: Pallas partial sums + tiny XLA finish ---------------
        vmem_limit = _vmem_limit_bytes()
        row_tile2 = _choose_row_tile(N, 1, H, W, 4, 8, budget_bytes=vmem_limit // 12)
        s, c = _masked_sum_count(loss, loss_thr, H, row_tile2, vmem_limit)
        mean = s / jnp.maximum(c.astype(jnp.float32), 1.0)
        # PyTorch would produce NaN for an empty kept set; return 0 instead.
        return jnp.where(n_valid > 0, mean, jnp.float32(0.0))

    def forward(self, score, target, name):
        loss = dict()
        if not isinstance(score, (list, tuple)):
            score = [score]
        balance_weights = [0.5, 0.5]
        sb_weights = 0.5
        if len(balance_weights) == len(score):
            functions = [self._ce_forward] * (len(balance_weights) - 1) + \
                        [self._ohem_forward]
            return sum([w * func(x, target)
                        for w, x, func in zip(balance_weights, score, functions)])
        elif len(score) == 1:
            loss[name + 'ohem_loss'] = sb_weights * self._ohem_forward(score[0], target)
            return loss
        else:
            raise ValueError('lengths of prediction and target are not identical!')

    __call__ = forward


# ----------------------------------------------------------------------------
if __name__ == "__main__":
    key = jax.random.PRNGKey(0)
    k1, k2, k3, k4 = jax.random.split(key, 4)

    N, C, H, W = 2, 8, 16, 16                 # small test shapes; P = N*H*W = 512
    ignore_label = 255

    score0 = jax.random.normal(k1, (N, C, H, W), dtype=jnp.float32)
    score1 = jax.random.normal(k2, (N, C, H, W), dtype=jnp.float32)
    target = jax.random.randint(k3, (N, H, W), 0, C, dtype=jnp.int32)
    ign_mask = jax.random.bernoulli(k4, 0.1, (N, H, W))
    target = jnp.where(ign_mask, jnp.int32(ignore_label), target)

    crit = OhemCrossEntropyPallas(ignore_label=ignore_label, thres=0.7, min_kept=64)

    # ---- pure-JAX reference (mirrors the PyTorch forward) -----------------------
    def ref_ce(score, tgt):
        logp = jax.nn.log_softmax(score.astype(jnp.float32), axis=1)
        valid = tgt != ignore_label
        tmp = jnp.where(valid, tgt, 0)
        ce = -jnp.take_along_axis(logp, tmp[:, None], axis=1)[:, 0]
        return jnp.where(valid, ce, 0.0)

    def ref_ohem(score, tgt, thres, min_kept):
        ce = ref_ce(score, tgt)
        valid = (tgt != ignore_label).reshape(-1)
        ce_f = ce.reshape(-1)
        pred = jnp.exp(-ce_f)                            # softmax prob at target class
        pred_m = jnp.where(valid, pred, jnp.inf)
        order = jnp.argsort(pred_m)
        n_valid = jnp.sum(valid)
        idx = jnp.minimum(min_kept, n_valid - 1)
        min_value = pred_m[order[idx]]
        threshold = jnp.maximum(min_value, thres)
        keep = valid & (pred < threshold)
        return jnp.sum(jnp.where(keep, ce_f, 0.0)) / jnp.maximum(jnp.sum(keep), 1)

    # two-score branch: 0.5 * per-pixel CE map + 0.5 * OHEM scalar  -> (N, H, W)
    two = jax.jit(lambda a, b, t: crit([a, b], t, name="aux_"))
    out = jax.block_until_ready(two(score0, score1, target))
    assert out.shape == (N, H, W) and out.dtype == jnp.float32
    assert bool(jnp.all(jnp.isfinite(out)))
    ref_two = 0.5 * ref_ce(score0, target) + 0.5 * ref_ohem(score1, target, 0.7, 64)
    assert bool(jnp.allclose(out, ref_two, rtol=1e-3, atol=1e-4))

    # single-score branch: dict with scalar OHEM loss
    one = jax.jit(lambda a, t: crit(a, t, name="aux_"))
    out_dict = jax.block_until_ready(one(score1, target))
    val = out_dict["aux_ohem_loss"]
    assert val.shape == () and bool(jnp.isfinite(val))
    assert bool(jnp.allclose(val, 0.5 * ref_ohem(score1, target, 0.7, 64),
                             rtol=1e-3, atol=1e-4))

    # exercise the approx_max_k path (k << P) used for production-size images
    crit_small_k = OhemCrossEntropyPallas(ignore_label=ignore_label, thres=0.7,
                                          min_kept=16)
    out2 = jax.block_until_ready(
        jax.jit(lambda a, t: crit_small_k._ohem_forward(a, t))(score1, target))
    assert out2.shape == () and bool(jnp.isfinite(out2))

    # exercise the optional bf16-logit path (v5e/v6e bandwidth option)
    crit_bf16 = OhemCrossEntropyPallas(ignore_label=ignore_label, thres=0.7,
                                       min_kept=64, cast_logits_to_bf16=True)
    out3 = jax.block_until_ready(
        jax.jit(lambda a, t: crit_bf16._ohem_forward(a, t))(score1, target))
    assert out3.shape == () and bool(jnp.isfinite(out3))

    print("KERNEL_OK")
</pallas_src>

<mosaic_0001>
module attributes {stable_mosaic.version = 11 : i64} {
  func.func @kernel(%arg0: i32, %arg1: i32, %arg2: memref<1x8x16x16xf32, #tpu.memory_space<vmem>>, %arg3: memref<1x16x16xi32, #tpu.memory_space<vmem>>, %arg4: memref<1x16x16xf32, #tpu.memory_space<vmem>>) attributes {dimension_semantics = [#tpu.dimension_semantics<parallel>, #tpu.dimension_semantics<parallel>], iteration_bounds = array<i64: 2, 1>, scalar_prefetch = 0 : i64, scratch_operands = 0 : i64, tpu.core_type = #tpu.core_type<tc>, window_params = [{transform_indices = @transform_0, window_bounds = array<i64: 1, 8, 16, 16>}, {transform_indices = @transform_1, window_bounds = array<i64: 1, 16, 16>}, {transform_indices = @transform_2, window_bounds = array<i64: 1, 16, 16>}]} {
    %c0 = arith.constant 0 : index
    %c0_0 = arith.constant 0 : index
    %c0_1 = arith.constant 0 : index
    %c0_2 = arith.constant 0 : index
    %0 = vector.load %arg2[%c0, %c0_0, %c0_1, %c0_2] : memref<1x8x16x16xf32, #tpu.memory_space<vmem>>, vector<1x8x16x16xf32>
    %1 = vector.shape_cast %0 : vector<1x8x16x16xf32> to vector<8x16x16xf32>
    %c0_3 = arith.constant 0 : index
    %c0_4 = arith.constant 0 : index
    %c0_5 = arith.constant 0 : index
    %2 = vector.load %arg3[%c0_3, %c0_4, %c0_5] : memref<1x16x16xi32, #tpu.memory_space<vmem>>, vector<1x16x16xi32>
    %3 = vector.shape_cast %2 : vector<1x16x16xi32> to vector<16x16xi32>
    %cst = arith.constant dense<0xFF800000> : vector<16x16xf32>
    %4 = vector.multi_reduction <maximumf>, %1, %cst [0] : vector<8x16x16xf32> to vector<16x16xf32>
    %5 = vector.shape_cast %4 : vector<16x16xf32> to vector<1x16x16xf32>
    %6 = vector.broadcast %5 : vector<1x16x16xf32> to vector<8x16x16xf32>
    %7 = arith.subf %1, %6 : vector<8x16x16xf32>
    %8 = math.exp %7 : vector<8x16x16xf32>
    %cst_6 = arith.constant dense<0.000000e+00> : vector<16x16xf32>
    %9 = vector.multi_reduction <add>, %8, %cst_6 [0] : vector<8x16x16xf32> to vector<16x16xf32>
    %c255_i32 = arith.constant 255 : i32
    %10 = vector.broadcast %c255_i32 : i32 to vector<16x16xi32>
    %11 = arith.cmpi eq, %3, %10 : vector<16x16xi32>
    %c0_i32 = arith.constant 0 : i32
    %12 = vector.broadcast %c0_i32 : i32 to vector<16x16xi32>
    %13 = arith.select %11, %12, %3 : vector<16x16xi1>, vector<16x16xi32>
    %14 = tpu.iota {dimensions = array<i32: 0>} : vector<8x16x16xi32>
    %15 = vector.shape_cast %13 : vector<16x16xi32> to vector<1x16x16xi32>
    %16 = vector.broadcast %15 : vector<1x16x16xi32> to vector<8x16x16xi32>
    %17 = arith.cmpi eq, %14, %16 : vector<8x16x16xi32>
    %cst_7 = arith.constant 0.000000e+00 : f32
    %18 = vector.broadcast %cst_7 : f32 to vector<8x16x16xf32>
    %19 = arith.select %17, %1, %18 : vector<8x16x16xi1>, vector<8x16x16xf32>
    %cst_8 = arith.constant dense<0.000000e+00> : vector<16x16xf32>
    %20 = vector.multi_reduction <add>, %19, %cst_8 [0] : vector<8x16x16xf32> to vector<16x16xf32>
    %21 = math.log %9 : vector<16x16xf32>
    %22 = arith.addf %4, %21 : vector<16x16xf32>
    %23 = arith.subf %22, %20 : vector<16x16xf32>
    %cst_9 = arith.constant 0.000000e+00 : f32
    %24 = vector.broadcast %cst_9 : f32 to vector<16x16xf32>
    %25 = arith.select %11, %24, %23 : vector<16x16xi1>, vector<16x16xf32>
    %c0_10 = arith.constant 0 : index
    %c0_11 = arith.constant 0 : index
    %c0_12 = arith.constant 0 : index
    %26 = vector.load %arg4[%c0_10, %c0_11, %c0_12] : memref<1x16x16xf32, #tpu.memory_space<vmem>>, vector<1x16x16xf32>
    %27 = vector.shape_cast %26 : vector<1x16x16xf32> to vector<16x16xf32>
    %28 = vector.shape_cast %25 : vector<16x16xf32> to vector<1x16x16xf32>
    tpu.vector_store %arg4[%c0_10, %c0_11, %c0_12], %28 {strides = array<i32>} : memref<1x16x16xf32, #tpu.memory_space<vmem>>, vector<1x16x16xf32>,
    return
  }
  func.func @transform_0(%arg0: i32, %arg1: i32) -> (i32, i32, i32, i32) {
    %c0_i32 = arith.constant 0 : i32
    %c0_i32_0 = arith.constant 0 : i32
    %c0_i32_1 = arith.constant 0 : i32
    return %arg0, %c0_i32, %arg1, %c0_i32_0 : i32, i32, i32, i32
  }
  func.func @transform_1(%arg0: i32, %arg1: i32) -> (i32, i32, i32) {
    %c0_i32 = arith.constant 0 : i32
    %c0_i32_0 = arith.constant 0 : i32
    return %arg0, %arg1, %c0_i32 : i32, i32, i32
  }
  func.func @transform_2(%arg0: i32, %arg1: i32) -> (i32, i32, i32) {
    %c0_i32 = arith.constant 0 : i32
    %c0_i32_0 = arith.constant 0 : i32
    return %arg0, %arg1, %c0_i32 : i32, i32, i32
  }
}

module attributes {stable_mosaic.version = 11 : i64} {
  func.func @kernel(%arg0: i32, %arg1: i32, %arg2: memref<1xf32, #tpu.memory_space<smem>>, %arg3: memref<1x16x16xf32, #tpu.memory_space<vmem>>, %arg4: memref<1x8x128xf32, #tpu.memory_space<vmem>>, %arg5: memref<1x8x128xi32, #tpu.memory_space<vmem>>) attributes {dimension_semantics = [#tpu.dimension_semantics<parallel>, #tpu.dimension_semantics<parallel>], iteration_bounds = array<i64: 2, 1>, scalar_prefetch = 0 : i64, scratch_operands = 0 : i64, tpu.core_type = #tpu.core_type<tc>, window_params = [{transform_indices = @transform_0, window_bounds = array<i64: 1>}, {transform_indices = @transform_1, window_bounds = array<i64: 1, 16, 16>}, {transform_indices = @transform_2, window_bounds = array<i64: 1, 8, 128>}, {transform_indices = @transform_3, window_bounds = array<i64: 1, 8, 128>}]} {
    %c0 = arith.constant 0 : index
    %0 = memref.load %arg2[%c0] : memref<1xf32, #tpu.memory_space<smem>>
    %c0_0 = arith.constant 0 : index
    %c0_1 = arith.constant 0 : index
    %c0_2 = arith.constant 0 : index
    %1 = vector.load %arg3[%c0_0, %c0_1, %c0_2] : memref<1x16x16xf32, #tpu.memory_space<vmem>>, vector<1x16x16xf32>
    %2 = vector.shape_cast %1 : vector<1x16x16xf32> to vector<16x16xf32>
    %3 = vector.broadcast %0 : f32 to vector<16x16xf32>
    %4 = arith.cmpf ogt, %2, %3 : vector<16x16xf32>
    %cst = arith.constant 0.000000e+00 : f32
    %5 = vector.broadcast %cst : f32 to vector<16x16xf32>
    %6 = arith.select %4, %2, %5 : vector<16x16xi1>, vector<16x16xf32>
    %7 = vector.shape_cast %6 : vector<16x16xf32> to vector<1x16x16xf32>
    %cst_3 = arith.constant dense<0.000000e+00> : vector<1xf32>
    %8 = vector.multi_reduction <add>, %7, %cst_3 [1, 2] : vector<1x16x16xf32> to vector<1xf32>
    %9 = vector.shape_cast %8 : vector<1xf32> to vector<1x1x1xf32>
    %10 = vector.extract %9[0, 0, 0] : f32 from vector<1x1x1xf32>
    %11 = arith.extui %4 : vector<16x16xi1> to vector<16x16xi32>
    %12 = vector.shape_cast %11 : vector<16x16xi32> to vector<1x16x16xi32>
    %cst_4 = arith.constant dense<0> : vector<1xi32>
    %13 = vector.multi_reduction <add>, %12, %cst_4 [1, 2] : vector<1x16x16xi32> to vector<1xi32>
    %14 = vector.shape_cast %13 : vector<1xi32> to vector<1x1x1xi32>
    %15 = vector.extract %14[0, 0, 0] : i32 from vector<1x1x1xi32>
    %16 = vector.broadcast %10 : f32 to vector<8x128xf32>
    %c0_5 = arith.constant 0 : index
    %c0_6 = arith.constant 0 : index
    %c0_7 = arith.constant 0 : index
    %17 = vector.load %arg4[%c0_5, %c0_6, %c0_7] : memref<1x8x128xf32, #tpu.memory_space<vmem>>, vector<1x8x128xf32>
    %18 = vector.shape_cast %17 : vector<1x8x128xf32> to vector<8x128xf32>
    %19 = vector.shape_cast %16 : vector<8x128xf32> to vector<1x8x128xf32>
    tpu.vector_store %arg4[%c0_5, %c0_6, %c0_7], %19 {strides = array<i32>} : memref<1x8x128xf32, #tpu.memory_space<vmem>>, vector<1x8x128xf32>,
    %20 = vector.broadcast %15 : i32 to vector<8x128xi32>
    %c0_8 = arith.constant 0 : index
    %c0_9 = arith.constant 0 : index
    %c0_10 = arith.constant 0 : index
    %21 = vector.load %arg5[%c0_8, %c0_9, %c0_10] : memref<1x8x128xi32, #tpu.memory_space<vmem>>, vector<1x8x128xi32>
    %22 = vector.shape_cast %21 : vector<1x8x128xi32> to vector<8x128xi32>
    %23 = vector.shape_cast %20 : vector<8x128xi32> to vector<1x8x128xi32>
    tpu.vector_store %arg5[%c0_8, %c0_9, %c0_10], %23 {strides = array<i32>} : memref<1x8x128xi32, #tpu.memory_space<vmem>>, vector<1x8x128xi32>,
    return
  }
  func.func @transform_0(%arg0: i32, %arg1: i32) -> i32 {
    %c0_i32 = arith.constant 0 : i32
    %c0_i32_0 = arith.constant 0 : i32
    return %c0_i32 : i32
  }
  func.func @transform_1(%arg0: i32, %arg1: i32) -> (i32, i32, i32) {
    %c0_i32 = arith.constant 0 : i32
    %c0_i32_0 = arith.constant 0 : i32
    return %arg0, %arg1, %c0_i32 : i32, i32, i32
  }
  func.func @transform_2(%arg0: i32, %arg1: i32) -> (i32, i32, i32) {
    %c1_i32 = arith.constant 1 : i32
    %0 = arith.muli %arg0, %c1_i32 : i32
    %1 = arith.addi %0, %arg1 : i32
    %c0_i32 = arith.constant 0 : i32
    %c0_i32_0 = arith.constant 0 : i32
    %c0_i32_1 = arith.constant 0 : i32
    return %1, %c0_i32, %c0_i32_0 : i32, i32, i32
  }
  func.func @transform_3(%arg0: i32, %arg1: i32) -> (i32, i32, i32) {
    %c1_i32 = arith.constant 1 : i32
    %0 = arith.muli %arg0, %c1_i32 : i32
    %1 = arith.addi %0, %arg1 : i32
    %c0_i32 = arith.constant 0 : i32
    %c0_i32_0 = arith.constant 0 : i32
    %c0_i32_1 = arith.constant 0 : i32
    return %1, %c0_i32, %c0_i32_0 : i32, i32, i32
  }
}

module attributes {stable_mosaic.version = 11 : i64} {
  func.func @kernel(%arg0: i32, %arg1: i32, %arg2: memref<1x8x16x16xf32, #tpu.memory_space<vmem>>, %arg3: memref<1x16x16xi32, #tpu.memory_space<vmem>>, %arg4: memref<1x16x16xf32, #tpu.memory_space<vmem>>) attributes {dimension_semantics = [#tpu.dimension_semantics<parallel>, #tpu.dimension_semantics<parallel>], iteration_bounds = array<i64: 2, 1>, scalar_prefetch = 0 : i64, scratch_operands = 0 : i64, tpu.core_type = #tpu.core_type<tc>, window_params = [{transform_indices = @transform_0, window_bounds = array<i64: 1, 8, 16, 16>}, {transform_indices = @transform_1, window_bounds = array<i64: 1, 16, 16>}, {transform_indices = @transform_2, window_bounds = array<i64: 1, 16, 16>}]} {
    %c0 = arith.constant 0 : index
    %c0_0 = arith.constant 0 : index
    %c0_1 = arith.constant 0 : index
    %c0_2 = arith.constant 0 : index
    %0 = vector.load %arg2[%c0, %c0_0, %c0_1, %c0_2] : memref<1x8x16x16xf32, #tpu.memory_space<vmem>>, vector<1x8x16x16xf32>
    %1 = vector.shape_cast %0 : vector<1x8x16x16xf32> to vector<8x16x16xf32>
    %c0_3 = arith.constant 0 : index
    %c0_4 = arith.constant 0 : index
    %c0_5 = arith.constant 0 : index
    %2 = vector.load %arg3[%c0_3, %c0_4, %c0_5] : memref<1x16x16xi32, #tpu.memory_space<vmem>>, vector<1x16x16xi32>
    %3 = vector.shape_cast %2 : vector<1x16x16xi32> to vector<16x16xi32>
    %cst = arith.constant dense<0xFF800000> : vector<16x16xf32>
    %4 = vector.multi_reduction <maximumf>, %1, %cst [0] : vector<8x16x16xf32> to vector<16x16xf32>
    %5 = vector.shape_cast %4 : vector<16x16xf32> to vector<1x16x16xf32>
    %6 = vector.broadcast %5 : vector<1x16x16xf32> to vector<8x16x16xf32>
    %7 = arith.subf %1, %6 : vector<8x16x16xf32>
    %8 = math.exp %7 : vector<8x16x16xf32>
    %cst_6 = arith.constant dense<0.000000e+00> : vector<16x16xf32>
    %9 = vector.multi_reduction <add>, %8, %cst_6 [0] : vector<8x16x16xf32> to vector<16x16xf32>
    %c255_i32 = arith.constant 255 : i32
    %10 = vector.broadcast %c255_i32 : i32 to vector<16x16xi32>
    %11 = arith.cmpi eq, %3, %10 : vector<16x16xi32>
    %c0_i32 = arith.constant 0 : i32
    %12 = vector.broadcast %c0_i32 : i32 to vector<16x16xi32>
    %13 = arith.select %11, %12, %3 : vector<16x16xi1>, vector<16x16xi32>
    %14 = tpu.iota {dimensions = array<i32: 0>} : vector<8x16x16xi32>
    %15 = vector.shape_cast %13 : vector<16x16xi32> to vector<1x16x16xi32>
    %16 = vector.broadcast %15 : vector<1x16x16xi32> to vector<8x16x16xi32>
    %17 = arith.cmpi eq, %14, %16 : vector<8x16x16xi32>
    %cst_7 = arith.constant 0.000000e+00 : f32
    %18 = vector.broadcast %cst_7 : f32 to vector<8x16x16xf32>
    %19 = arith.select %17, %1, %18 : vector<8x16x16xi1>, vector<8x16x16xf32>
    %cst_8 = arith.constant dense<0.000000e+00> : vector<16x16xf32>
    %20 = vector.multi_reduction <add>, %19, %cst_8 [0] : vector<8x16x16xf32> to vector<16x16xf32>
    %21 = math.log %9 : vector<16x16xf32>
    %22 = arith.addf %4, %21 : vector<16x16xf32>
    %23 = arith.subf %22, %20 : vector<16x16xf32>
    %cst_9 = arith.constant 0.000000e+00 : f32
    %24 = vector.broadcast %cst_9 : f32 to vector<16x16xf32>
    %25 = arith.select %11, %24, %23 : vector<16x16xi1>, vector<16x16xf32>
    %c0_10 = arith.constant 0 : index
    %c0_11 = arith.constant 0 : index
    %c0_12 = arith.constant 0 : index
    %26 = vector.load %arg4[%c0_10, %c0_11, %c0_12] : memref<1x16x16xf32, #tpu.memory_space<vmem>>, vector<1x16x16xf32>
    %27 = vector.shape_cast %26 : vector<1x16x16xf32> to vector<16x16xf32>
    %28 = vector.shape_cast %25 : vector<16x16xf32> to vector<1x16x16xf32>
    tpu.vector_store %arg4[%c0_10, %c0_11, %c0_12], %28 {strides = array<i32>} : memref<1x16x16xf32, #tpu.memory_space<vmem>>, vector<1x16x16xf32>,
    return
  }
  func.func @transform_0(%arg0: i32, %arg1: i32) -> (i32, i32, i32, i32) {
    %c0_i32 = arith.constant 0 : i32
    %c0_i32_0 = arith.constant 0 : i32
    %c0_i32_1 = arith.constant 0 : i32
    return %arg0, %c0_i32, %arg1, %c0_i32_0 : i32, i32, i32, i32
  }
  func.func @transform_1(%arg0: i32, %arg1: i32) -> (i32, i32, i32) {
    %c0_i32 = arith.constant 0 : i32
    %c0_i32_0 = arith.constant 0 : i32
    return %arg0, %arg1, %c0_i32 : i32, i32, i32
  }
  func.func @transform_2(%arg0: i32, %arg1: i32) -> (i32, i32, i32) {
    %c0_i32 = arith.constant 0 : i32
    %c0_i32_0 = arith.constant 0 : i32
    return %arg0, %arg1, %c0_i32 : i32, i32, i32
  }
}

</mosaic_0001>

<bundles_post_ra>
// kernel: _lambda_.5
= control target key start
LH: loop header
LB: loop body
LE: loop exit
PB: predicated region body
PF: predicated region fallthrough
CT: control target
= control target key end

     0   :  { %s462_s14 = smov 0   ;;  %s464_s15 = smov 0   ;;  %s502_s0 = inlined_call_operand.<no memory space> [shape: f32[1], index: 0, kind: input, shape index: {}]   ;;  %s503_s1 = inlined_call_operand.vmem [shape: f32[2,16,16], index: 1, kind: input, shape index: {}]   ;;  %s504_s2 = inlined_call_operand.vmem [shape: f32[2,8,128], index: 2, kind: output, shape index: {0}]   ;;  %s505_s3 = inlined_call_operand.vmem [shape: s32[2,8,128], index: 3, kind: output, shape index: {1}]  }
   0x1   :  { %9 = sst [smem:[#allocation2]] %s502_s0  ;;  %s466_s16 = smov 0  }
   0x2 LB: > { %s27_s0 = sadd.s32 1, %s432_s15  ;;  %p377_p0 = scmp.ge.s32.totalorder %s436_s16, 1  ;;  %s436_s16 = sphi %s466_s16, %s15_s16   ;;  %s432_s15 = sphi %s464_s15, %s507_s15   ;;  %s428_s14 = sphi %s462_s14, %s506_s14  }
   0x3   : > { %p29_p1 = scmp.ge.s32.totalorder %s27_s0, 2  ;;  %p164_p2 = scmp.lt.s32.totalorder %s436_s16, 3 }
   0x5   : > { %s509_s0 = smov (%p29_p1, %s27_s0), 0  ;;  %p165_p3 = pnand %p377_p0, %p164_p2 }
   0x6   : > { %p198_p4 = scmp.lt.s32.totalorder (!%p165_p3), %s428_s14, 1  ;;  %s219_s17 = sld [smem:[#allocation2]] (!%p165_p3)  ;;  %vm227_vm0 = vcmask (!%p165_p3), 130048   ;;  %v438_v3 = vmov (!%p165_p3), 0  }
   0x7   : > { %168 = sbr.rel (%p165_p3) target bundleno = 241 (0xf1), region = 28 }
   0xc   : > { %v222_v2 = vstv (!%p165_p3), %s219_s17 }
   0xe   : > { %s511_s14 = smov (!%p198_p4, %s428_s14), 1 }
   0xf   : > { %s384_s18 = sshll.u32 %s511_s14, 4  ;;  %s380_s22 = sshll.u32 %s511_s14, 3 }
  0x10   : > { %s205_s21 = scalar_lea.vmem %s503_s1, %s384_s18  ;;  %s211_s25 = scalar_lea.vmem %s504_s2, %s380_s22 }
  0x11   : > { %v220_v0 = vld [vmem:[%s205_s21] sm:$0xff]  ;;  %v221_v1 = vld [vmem:[%s205_s21 + $0x8] sm:$0xff]  ;;  %s217_s29 = scalar_lea.vmem %s505_s3, %s380_s22 }
  0x12   : > { %vm223_vm1 = vcmp.gt.f32.partialorder %v220_v0, %v222_v2  ;;  %vm224_vm2 = vcmp.gt.f32.partialorder %v221_v1, %v222_v2 }
  0x13   : > { %v240_v4 = vsel %vm223_vm1, 1, %v438_v3  ;;  %v241_v5 = vsel %vm224_vm2, 1, %v438_v3  ;;  %v225_v6 = vsel %vm223_vm1, %v220_v0, 0.0  ;;  %v226_v7 = vsel %vm224_vm2, %v221_v1, 0.0 }
  0x14   : > { %v242_v8 = vsel %vm227_vm0, %v240_v4, 0  ;;  %v243_v9 = vsel %vm227_vm0, %v241_v5, 0  ;;  %v228_v10 = vsel %vm227_vm0, %v225_v6, 0.0  ;;  %v229_v11 = vsel %vm227_vm0, %v226_v7, 0.0 }
  0x15   : > { %v244_v12 = vadd.s32 %v243_v9, %v242_v8  ;;  %v230_v13 = vadd.f32 %v229_v11, %v228_v10 }
  0x17   : > { %v246_v14 = vshrl.u32 %v244_v12, 16  ;;  %231 = vadd.xlane.f32.xlu1 %v230_v13  ;;  %v245_v15 = vand.u32 65535, %v244_v12 }
  0x19   : > { %v248_v16 = vcvt.s32.f32 %v246_v14  ;;  %v247_v17 = vcvt.s32.f32 %v245_v15 }
  0x1b   : > { %251 = vadd.xlane.f32.xlu0 %v248_v16 }
  0x1f   : > { %249 = vadd.xlane.f32.xlu0 %v247_v17 }
  0xa4   : > { %v232_v18 = vpop.xlane.xlu1 %231 }
  0xa5   : > { %v233_v19 = vrot.slane %v232_v18, 4 }
  0xa7   : > { %v234_v20 = vadd.f32 %v233_v19, %v232_v18 }
  0xa8   : > { %v252_v21 = vpop.xlane.xlu0 %251 }
  0xa9   : > { %v254_v22 = vcvt.f32.s32 %v252_v21  ;;  %v235_v23 = vrot.slane %v234_v20, 2 }
  0xab   : > { %v236_v24 = vadd.f32 %v235_v23, %v234_v20  ;;  %v255_v26 = vshll.u32 %v254_v22, 16 }
  0xac   : > { %v250_v25 = vpop.xlane.xlu0 %249 }
  0xad   : > { %v253_v27 = vcvt.f32.s32 %v250_v25  ;;  %v237_v28 = vrot.slane %v236_v24, 1 }
  0xaf   : > { %v256_v29 = vadd.s32 %v255_v26, %v253_v27  ;;  %v238_v30 = vadd.f32 %v237_v28, %v236_v24 }
  0xb1   : > { %v257_v31 = vrot.slane %v256_v29, 4  ;;  %385 = vpush %v238_v30 }
  0xb3   : > { %v258_v32 = vadd.s32 %v257_v31, %v256_v29 }
  0xb5   : > { %v259_v33 = vrot.slane %v258_v32, 2 }
  0xb7   : > { %v260_v34 = vadd.s32 %v259_v33, %v258_v32 }
  0xb9   : > { %v261_v35 = vrot.slane %v260_v34, 1 }
  0xbb   : > { %v262_v36 = vadd.s32 %v261_v35, %v260_v34 }
  0xbd   : > { %387 = vpush %v262_v36 }
  0xe2   : > { %s386_s26 = spop %385 }
  0xe3   : > { %v264_v37 = vstv %s386_s26 }
  0xe4   : > { %265 = vst [vmem:[%s211_s25] sm:$0xff] %v264_v37 }
  0xee   : > { %s388_s30 = spop %387 }
  0xef   : > { %v266_v38 = vstv %s388_s30 }
  0xf0   : > { %267 = vst [vmem:[%s217_s29] sm:$0xff] %v266_v38 }
  0xf1 PF: > { %s15_s16 = sadd.s32 1, %s436_s16   ;;  %s506_s14 = smov %s432_s15 }
  0xf2   : > { %p12_p5 = scmp.ge.s32.totalorder %s15_s16, 4   ;;  %s507_s15 = smov %s509_s0 }
  0xf4   :  { %14 = sbr.rel (!%p12_p5) target bundleno = 2 (0x2), region = 70 }

// kernel: _lambda_.4
= control target key start
LH: loop header
LB: loop body
LE: loop exit
PB: predicated region body
PF: predicated region fallthrough
CT: control target
= control target key end

     0   :  { %7 = vsyncpa [#allocation3], 0  ;;  %s1224_s0 = inlined_call_operand.hbm [shape: f32[2,8,16,16], index: 0, kind: input, shape index: {}]   ;;  %s1225_s1 = inlined_call_operand.hbm [shape: s32[2,16,16], index: 1, kind: input, shape index: {}]   ;;  %s1226_s2 = inlined_call_operand.vmem [shape: f32[2,16,16], index: 2, kind: output, shape index: {}]  }
   0x1   :  { %9 = vsyncpa [#allocation3 + $0x1], 0 }
   0x2   :  { %10 = vsyncpa [#allocation5], 0 }
   0x3   :  { %12 = vsyncpa [#allocation5 + $0x1], 0  ;;  %s816_s9 = smov 0   ;;  %s818_s10 = smov 0  }
   0x4   :  { %s820_s11 = smov 0   ;;  %s822_s12 = smov 0  }
   0x5   :  { %s824_s13 = smov 0   ;;  %s826_s14 = smov 0  }
   0x6 LB: > { %s563_s15 = sadd.s32 4294967295, %s795_s14   ;;  %s30_s16 = sadd.s32 1, %s791_s13  ;;  %s795_s14 = sphi %s826_s14, %s18_s14   ;;  %s791_s13 = sphi %s824_s13, %s1237_s13   ;;  %s787_s12 = sphi %s822_s12, %s1236_s12   ;;  %s783_s11 = sphi %s820_s11, %s1235_s11   ;;  %s779_s10 = sphi %s818_s10, %s1234_s10   ;;  %s775_s9 = sphi %s816_s9, %s1233_s9  }
   0x7   : > { %p32_p0 = scmp.ge.s32.totalorder %s30_s16, 2  ;;  %s39_s17 = sadd.s32 1, %s783_s11 }
   0x8   : > { %p46_p1 = scmp.ne.s32.totalorder %s783_s11, %s779_s10  ;;  %p47_p2 = scmp.eq.s32.totalorder %s795_s14, 0 }
   0x9   : > { %s1239_s16 = smov (%p32_p0, %s30_s16), 0  ;;  %p52_p4 = scmp.ne.s32.totalorder %s779_s10, %s775_s9 }
   0xa   : > { %p852_p3 = por %p47_p2, %p46_p1  ;;  %s34_s19 = ssub.s32 %s791_s13, %s1239_s16 }
   0xb   : > { %p53_p5 = scmp.eq.s32.totalorder %s563_s15, 0  ;;  %p37_p6 = scmp.eq.s32.totalorder %s34_s19, 0 }
   0xc   : > { %p594_p8 = scmp.lt.s32.totalorder %s795_s14, 2  ;;  %s868_s22 = sand.u32 1, %s783_s11  }
   0xd   : > { %p859_p7 = por %p53_p5, %p52_p4  ;;  %s580_s23 = sshll.u32 %s791_s13, 11 }
   0xe   : > { %s865_s21 = scalar_select %p37_p6, %s783_s11, %s39_s17  }
   0xf   : > { %s1229_s20 = scalar_select %p859_p7, 1, 0 }
  0x10   : > { %s567_s24 = sshll.u32 %s868_s22, 7  ;;  %s875_s27 = scalar_lea.hbm %s1224_s0, %s580_s23 }
  0x11   : > { %s136_s28 = scalar_lea.vmem [#allocation2], %s567_s24  ;;  %p879_p9 = pnand %p594_p8, %p852_p3 }
  0x12   : > { %s145_s29 = sshll.u32 %s136_s28, 4  ;;  %s133_s3 = scalar_lea.sflag [#allocation3], %s868_s22  ;;  %s883_s29 = int_to_ptr.vmem [resolvable:$true] %s145_s29 }
  0x13   : > { %s681_s4 = scalar_lea.hbm %s875_s27, 2048  ;;  %p683_p11 = pneg %p879_p9 }
  0x14   : > { %p682_p10 = scmp.ne.s32.totalorder %s875_s27, %s681_s4  ;;  %s686_s7 = scalar_lea.hbm %s1224_s0, 4096 }
  0x15   : > { %p687_p0 = scmp.lt.u32.totalorder %s875_s27, %s1224_s0  ;;  %p688_p1 = scmp.lt.u32.totalorder %s686_s7, %s681_s4 }
  0x16   : > { %p684_p12 = pnand %p683_p11, %p682_p10  ;;  %p690_p3 = scmp.lt.u32.totalorder %s681_s4, %s875_s27 }
  0x17   : > { %p689_p2 = por %p688_p1, %p687_p0 }
  0x18   : > { %p685_p13 = pneg %p684_p12 }
  0x19   : > { %p691_p4 = por %p690_p3, %p689_p2 }
  0x1b   : > { %p692_p5 = pnand %p691_p4, %p685_p13 }
  0x1d   : > { %695 = shalt.err (!%p692_p5)
}
  0x1e   : > { %s696_s15 = scalar_lea.vmem %s883_s29, 2048  ;;  %s797_s17 = smov [#allocation2]  }
  0x1f   : > { %p697_p6 = scmp.ne.s32.totalorder %s883_s29, %s696_s15  ;;  %s701_s18 = sshll.u32 %s797_s17, 4  ;;  %s702_s18 = int_to_ptr.vmem [resolvable:$false] %s701_s18 }
  0x20   : > { %s703_s19 = scalar_lea.vmem %s702_s18, 4096  ;;  %p704_p12 = scmp.lt.s32.totalorder %s883_s29, %s702_s18 }
  0x21   : > { %p699_p8 = pnand %p697_p6, %p683_p11  ;;  %p705_p0 = scmp.lt.s32.totalorder %s703_s19, %s696_s15 }
  0x23   : > { %p700_p10 = pneg %p699_p8  ;;  %p706_p1 = por %p705_p0, %p704_p12 }
  0x25   : > { %p707_p2 = pnand %p706_p1, %p700_p10 }
  0x27   : > { %710 = shalt.err (!%p707_p2)
}
  0x28   : > { %s798_s23 = smov 128   ;;  %s799_s24 = smov 8  }
  0x29   : > { %590 = dma.hbm_to_vmem [thread:$0]  (!%p879_p9), %s875_s27, 2048, %s883_s29, %s133_s3, %s798_s23, %s798_s23, %s799_s24  }
  0x2a   : > { %p573_p13 = scmp.ge.s32.totalorder %s795_s14, 1  ;;  %p176_p3 = scmp.lt.s32.totalorder %s795_s14, 3 }
  0x2b   : > { %s570_s25 = sshll.u32 %s868_s22, 4  ;;  %s581_s28 = sshll.u32 %s791_s13, 8 }
  0x2c   : > { %p919_p4 = pnand %p573_p13, %p176_p3  ;;  %s159_s4 = scalar_lea.vmem [#allocation4], %s570_s25 }
  0x2d   : > { %s168_s5 = sshll.u32 %s159_s4, 4  ;;  %s927_s8 = scalar_lea.hbm %s1225_s1, %s581_s28  ;;  %s929_s5 = int_to_ptr.vmem [resolvable:$true] %s168_s5 }
  0x2e   : > { %s156_s27 = scalar_lea.sflag [#allocation5], %s868_s22  ;;  %s711_s29 = scalar_lea.hbm %s927_s8, 256 }
  0x2f   : > { %p712_p5 = scmp.ne.s32.totalorder %s927_s8, %s711_s29  ;;  %s716_s15 = scalar_lea.hbm %s1225_s1, 512 }
  0x30   : > { %p717_p10 = scmp.lt.u32.totalorder %s927_s8, %s1225_s1  ;;  %p718_p12 = scmp.lt.u32.totalorder %s716_s15, %s711_s29 }
  0x31   : > { %p714_p6 = pnand %p712_p5, %p683_p11  ;;  %p720_p1 = scmp.lt.u32.totalorder %s711_s29, %s927_s8 }
  0x32   : > { %p719_p0 = por %p718_p12, %p717_p10 }
  0x33   : > { %p715_p8 = pneg %p714_p6 }
  0x34   : > { %p721_p2 = por %p720_p1, %p719_p0 }
  0x36   : > { %p722_p13 = pnand %p721_p2, %p715_p8 }
  0x38   : > { %725 = shalt.err (!%p722_p13)
}
  0x39   : > { %s726_s19 = scalar_lea.vmem %s929_s5, 256  ;;  %s800_s25 = smov [#allocation4]  }
  0x3a   : > { %p727_p3 = scmp.ne.s32.totalorder %s929_s5, %s726_s19  ;;  %s731_s28 = sshll.u32 %s800_s25, 4  ;;  %s732_s28 = int_to_ptr.vmem [resolvable:$false] %s731_s28 }
  0x3b   : > { %s733_s4 = scalar_lea.vmem %s732_s28, 512  ;;  %p734_p7 = scmp.lt.s32.totalorder %s929_s5, %s732_s28 }
  0x3c   : > { %p729_p5 = pnand %p727_p3, %p683_p11  ;;  %p735_p10 = scmp.lt.s32.totalorder %s733_s4, %s726_s19 }
  0x3e   : > { %p730_p6 = pneg %p729_p5  ;;  %p736_p12 = por %p735_p10, %p734_p7 }
  0x40   : > { %p737_p0 = pnand %p736_p12, %p730_p6 }
  0x42   : > { %740 = shalt.err (!%p737_p0)
}
  0x43   : > { %593 = dma.hbm_to_vmem [thread:$0]  (!%p879_p9), %s927_s8, 256, %s929_s5, %s156_s27, %s798_s23, %s798_s23, %s799_s24  }
  0x44   : > { %180 = sbr.rel (%p919_p4) target bundleno = 143 (0x8f), region = 28  ;;  %s182_s6 = sand.u32 (!%p919_p4), 1, %s779_s10  }
  0x45   : > { %s574_s7 = sshll.u32 (!%p919_p4), %s182_s6, 7  ;;  %s183_s29 = scalar_lea.sflag (!%p919_p4), [#allocation3], %s182_s6 }
  0x46   : > { %s963_s3 = scalar_lea.vmem (!%p919_p4), [#allocation2], %s574_s7  ;;  %p1232_p7 = scmp.ne.s32.totalorder (!%p919_p4), %s1229_s20, 0 }
  0x4b   : > { %766 = dma.done.wait (%p1232_p7), %s183_s29, 2048  }
  0x4c   : > { %768 = vsyncadd (%p1232_p7), %s183_s29, 4294965248  ;;  %s575_s22 = sshll.u32 %s182_s6, 4  ;;  %s192_s30 = scalar_lea.sflag [#allocation5], %s182_s6 }
  0x4d   : > { %s969_s9 = scalar_lea.vmem [#allocation4], %s575_s22 }
  0x4e   : > { %770 = dma.done.wait (%p1232_p7), %s192_s30, 256  }
  0x4f   : > { %772 = vsyncadd (%p1232_p7), %s192_s30, 4294967040  ;;  %vm255_vm0 = vcmask 130048   ;;  %v976_v0 = vld [vmem:[%s963_s3] sm:$0xff]  ;;  %v979_v1 = vld [vmem:[%s963_s3 + $0x8] sm:$0xff]  ;;  %p228_p9 = scmp.lt.s32.totalorder %s787_s12, 1 }
  0x50   : > { %v982_v2 = vld [vmem:[%s963_s3 + $0x10] sm:$0xff]  ;;  %v985_v3 = vld [vmem:[%s963_s3 + $0x18] sm:$0xff]  ;;  %v988_v4 = vld [vmem:[%s963_s3 + $0x20] sm:$0xff]  ;;  %v256_v6 = vsel %vm255_vm0, %v976_v0, -inf  ;;  %v271_v8 = vsel %vm255_vm0, %v979_v1, -inf }
  0x51   : > { %v991_v5 = vld [vmem:[%s963_s3 + $0x28] sm:$0xff]  ;;  %v257_v7 = vsel %vm255_vm0, %v982_v2, -inf  ;;  %v1000_v9 = vld [vmem:[%s963_s3 + $0x30] sm:$0xff]  ;;  %v1003_v10 = vld [vmem:[%s963_s3 + $0x38] sm:$0xff]  ;;  %v258_v12 = vsel %vm255_vm0, %v988_v4, -inf  ;;  %v272_v13 = vsel %vm255_vm0, %v985_v3, -inf }
  0x52   : > { %v1006_v11 = vld [vmem:[%s963_s3 + $0x40] sm:$0xff]  ;;  %v273_v14 = vsel %vm255_vm0, %v991_v5, -inf  ;;  %v1015_v15 = vld [vmem:[%s963_s3 + $0x48] sm:$0xff]  ;;  %v1018_v16 = vld [vmem:[%s963_s3 + $0x50] sm:$0xff]  ;;  %v259_v18 = vmax.f32 %v256_v6, %v258_v12  ;;  %v260_v19 = vsel %vm255_vm0, %v1000_v9, -inf  ;;  %v275_v27 = vsel %vm255_vm0, %v1003_v10, -inf }
  0x53   : > { %v1021_v17 = vld [vmem:[%s963_s3 + $0x58] sm:$0xff]  ;;  %v262_v20 = vsel %vm255_vm0, %v1006_v11, -inf  ;;  %v274_v21 = vmax.f32 %v271_v8, %v273_v14  ;;  %v1028_v22 = vld [vmem:[%s963_s3 + $0x60] sm:$0xff]  ;;  %v1031_v23 = vld [vmem:[%s963_s3 + $0x68] sm:$0xff]  ;;  %v261_v25 = vmax.f32 %v257_v7, %v260_v19  ;;  %v264_v26 = vsel %vm255_vm0, %v1018_v16, -inf  ;;  %s1241_s12 = smov (!%p228_p9, %s787_s12), 1 }
  0x54   : > { %v1034_v24 = vld [vmem:[%s963_s3 + $0x70] sm:$0xff]  ;;  %v277_v28 = vsel %vm255_vm0, %v1015_v15, -inf  ;;  %v1043_v29 = vld [vmem:[%s963_s3 + $0x78] sm:$0xff]  ;;  %v263_v30 = vmax.f32 %v259_v18, %v262_v20  ;;  %v266_v31 = vsel %vm255_vm0, %v1028_v22, -inf  ;;  %v276_v33 = vmax.f32 %v272_v13, %v275_v27  ;;  %s582_s20 = sshll.u32 %s1241_s12, 4 }
  0x55   : > { %v268_v32 = vsel %vm255_vm0, %v1034_v24, -inf  ;;  %v265_v34 = vmax.f32 %v261_v25, %v264_v26  ;;  %v278_v35 = vmax.f32 %v274_v21, %v277_v28  ;;  %v279_v36 = vsel %vm255_vm0, %v1021_v17, -inf  ;;  %v1058_v45 = vld [vmem:[%s969_s9] sm:$0xff]  ;;  %v1063_v47 = vld [vmem:[%s969_s9 + $0x8] sm:$0xff]  ;;  %s235_s26 = scalar_lea.vmem %s1226_s2, %s582_s20 }
  0x56   : > { %v281_v37 = vsel %vm255_vm0, %v1031_v23, -inf  ;;  %v267_v38 = vmax.f32 %v263_v30, %v266_v31  ;;  %v280_v39 = vmax.f32 %v276_v33, %v279_v36  ;;  %v283_v40 = vsel %vm255_vm0, %v1043_v29, -inf }
  0x57   : > { %v269_v41 = vmax.f32 %v265_v34, %v268_v32  ;;  %v282_v42 = vmax.f32 %v278_v35, %v281_v37  ;;  %vm364_vm1 = vcmp.eq.s32.totalorder %v1058_v45, 255  ;;  %vm365_vm2 = vcmp.eq.s32.totalorder %v1063_v47, 255 }
  0x58   : > { %v284_v43 = vmax.f32 %v280_v39, %v283_v40  ;;  %v1086_v60 = vsel %vm364_vm1, 0, %v1058_v45  ;;  %v1095_v7 = vsel %vm365_vm2, 0, %v1063_v47 }
  0x59   : > { %v1055_v44 = vmax.f32 %v267_v38, %v269_v41  ;;  %vm368_vm3 = vcmp.eq.s32.totalorder %v1086_v60, 0  ;;  %vm370_vm4 = vcmp.eq.s32.totalorder %v1086_v60, 1  ;;  %vm369_vm5 = vcmp.eq.s32.totalorder %v1095_v7, 0 }
  0x5a   : > { %v1060_v46 = vmax.f32 %v282_v42, %v284_v43  ;;  %vm371_vm6 = vcmp.eq.s32.totalorder %v1095_v7, 1  ;;  %vm372_vm7 = vcmp.eq.s32.totalorder %v1086_v60, 2  ;;  %vm373_vm8 = vcmp.eq.s32.totalorder %v1095_v7, 2 }
  0x5b   : > { %v286_v48 = vsub.f32 %v976_v0, %v1055_v44  ;;  %v288_v49 = vsub.f32 %v982_v2, %v1055_v44  ;;  %v290_v52 = vsub.f32 %v988_v4, %v1055_v44  ;;  %v292_v54 = vsub.f32 %v1000_v9, %v1055_v44 }
  0x5c   : > { %v287_v50 = vsub.f32 %v979_v1, %v1060_v46  ;;  %v289_v51 = vsub.f32 %v985_v3, %v1060_v46  ;;  %v291_v53 = vsub.f32 %v991_v5, %v1060_v46  ;;  %v293_v58 = vsub.f32 %v1003_v10, %v1060_v46 }
  0x5d   : > { %v302_v55 = vmul.f32 1.442695, %v286_v48  ;;  %v306_v57 = vmul.f32 1.442695, %v288_v49  ;;  %v294_v61 = vsub.f32 %v1006_v11, %v1055_v44  ;;  %v310_v62 = vmul.f32 1.442695, %v290_v52 }
  0x5e   : > { %v304_v56 = vmul.f32 1.442695, %v287_v50  ;;  %v308_v59 = vmul.f32 1.442695, %v289_v51  ;;  %v295_v63 = vsub.f32 %v1015_v15, %v1060_v46  ;;  %v312_v6 = vmul.f32 1.442695, %v291_v53 }
  0x5f   : > { %645 = vpow2.f32 %v302_v55  ;;  %v296_v8 = vsub.f32 %v1018_v16, %v1055_v44  ;;  %v314_v12 = vmul.f32 1.442695, %v292_v54  ;;  %v297_v13 = vsub.f32 %v1021_v17, %v1060_v46 }
  0x60   : > { %647 = vpow2.f32 %v304_v56  ;;  %v316_v14 = vmul.f32 1.442695, %v293_v58  ;;  %v298_v18 = vsub.f32 %v1028_v22, %v1055_v44  ;;  %v318_v19 = vmul.f32 1.442695, %v294_v61 }
  0x61   : > { %649 = vpow2.f32 %v306_v57  ;;  %v299_v20 = vsub.f32 %v1031_v23, %v1060_v46  ;;  %v320_v21 = vmul.f32 1.442695, %v295_v63  ;;  %v300_v25 = vsub.f32 %v1034_v24, %v1055_v44 }
  0x62   : > { %651 = vpow2.f32 %v308_v59  ;;  %v301_v26 = vsub.f32 %v1043_v29, %v1060_v46  ;;  %v322_v27 = vmul.f32 1.442695, %v296_v8  ;;  %v324_v28 = vmul.f32 1.442695, %v297_v13 }
  0x63   : > { %653 = vpow2.f32 %v310_v62  ;;  %v326_v30 = vmul.f32 1.442695, %v298_v18  ;;  %vm374_vm9 = vcmp.eq.s32.totalorder %v1086_v60, 3  ;;  %vm375_vm10 = vcmp.eq.s32.totalorder %v1095_v7, 3 }
  0x64   : > { %655 = vpow2.f32 %v312_v6  ;;  %v328_v31 = vmul.f32 1.442695, %v299_v20  ;;  %v384_v32 = vsel %vm368_vm3, %v976_v0, 0.0  ;;  %v386_v33 = vsel %vm370_vm4, %v982_v2, 0.0 }
  0x65   : > { %657 = vpow2.f32 %v314_v12  ;;  %v330_v35 = vmul.f32 1.442695, %v300_v25  ;;  %v332_v36 = vmul.f32 1.442695, %v301_v26  ;;  %vm376_vm11 = vcmp.eq.s32.totalorder %v1086_v60, 4 }
  0x66   : > { %659 = vpow2.f32 %v316_v14  ;;  %vm377_vm12 = vcmp.eq.s32.totalorder %v1095_v7, 4  ;;  %v385_v0 = vsel %vm369_vm5, %v979_v1, 0.0  ;;  %v400_v40 = vsel %vm255_vm0, %v384_v32, 0.0 }
  0x67   : > { %661 = vpow2.f32 %v318_v19  ;;  %v401_v41 = vsel %vm255_vm0, %v386_v33, 0.0  ;;  %v387_v48 = vsel %vm371_vm6, %v985_v3, 0.0  ;;  %v388_v1 = vsel %vm372_vm7, %v988_v4, 0.0 }
  0x68   : > { %663 = vpow2.f32 %v320_v21  ;;  %v389_v52 = vsel %vm373_vm8, %v991_v5, 0.0  ;;  %v402_v56 = vadd.f32 %v401_v41, %v400_v40  ;;  %v390_v4 = vsel %vm374_vm9, %v1000_v9, 0.0 }
  0x69   : > { %v646_v34 = vpop.eup %645  ;;  %665 = vpow2.f32 %v322_v27  ;;  %v403_v59 = vsel %vm255_vm0, %v388_v1, 0.0  ;;  %v391_v63 = vsel %vm375_vm10, %v1003_v10, 0.0  ;;  %v392_v6 = vsel %vm376_vm11, %v1006_v11, 0.0 }
  0x6a   : > { %v648_v37 = vpop.eup %647  ;;  %667 = vpow2.f32 %v324_v28  ;;  %v334_v38 = vsel %vm255_vm0, %v646_v34, 0.0  ;;  %v415_v9 = vsel %vm255_vm0, %v385_v0, 0.0  ;;  %v416_v14 = vsel %vm255_vm0, %v387_v48, 0.0 }
  0x6b   : > { %v650_v39 = vpop.eup %649  ;;  %669 = vpow2.f32 %v326_v30  ;;  %v349_v2 = vsel %vm255_vm0, %v648_v37, 0.0  ;;  %v404_v21 = vadd.f32 %v403_v59, %v402_v56  ;;  %v417_v25 = vadd.f32 %v416_v14, %v415_v9 }
  0x6c   : > { %v652_v42 = vpop.eup %651  ;;  %671 = vpow2.f32 %v328_v31  ;;  %v335_v43 = vsel %vm255_vm0, %v650_v39, 0.0  ;;  %v405_v11 = vsel %vm255_vm0, %v390_v4, 0.0  ;;  %v418_v28 = vsel %vm255_vm0, %v389_v52, 0.0 }
  0x6d   : > { %v654_v49 = vpop.eup %653  ;;  %673 = vpow2.f32 %v330_v35  ;;  %v336_v50 = vadd.f32 %v335_v43, %v334_v38  ;;  %v350_v51 = vsel %vm255_vm0, %v652_v42, 0.0  ;;  %v419_v33 = vadd.f32 %v418_v28, %v417_v25 }
  0x6e   : > { %v656_v53 = vpop.eup %655  ;;  %675 = vpow2.f32 %v332_v36  ;;  %v337_v54 = vsel %vm255_vm0, %v654_v49, 0.0  ;;  %v351_v55 = vadd.f32 %v350_v51, %v349_v2  ;;  %v420_v34 = vsel %vm255_vm0, %v391_v63, 0.0 }
  0x6f   : > { %v658_v3 = vpop.eup %657  ;;  %v338_v57 = vadd.f32 %v337_v54, %v336_v50  ;;  %v352_v58 = vsel %vm255_vm0, %v656_v53, 0.0  ;;  %vm378_vm13 = vcmp.eq.s32.totalorder %v1086_v60, 5  ;;  %v393_v38 = vsel %vm377_vm12, %v1015_v15, 0.0 }
  0x70   : > { %v660_v61 = vpop.eup %659  ;;  %v339_v62 = vsel %vm255_vm0, %v658_v3, 0.0  ;;  %v353_v5 = vadd.f32 %v352_v58, %v351_v55  ;;  %vm379_vm14 = vcmp.eq.s32.totalorder %v1095_v7, 5  ;;  %v406_v40 = vadd.f32 %v405_v11, %v404_v21 }
  0x71   : > { %v662_v8 = vpop.eup %661  ;;  %v340_v12 = vadd.f32 %v339_v62, %v338_v57  ;;  %v354_v13 = vsel %vm255_vm0, %v660_v61, 0.0  ;;  %v407_v48 = vsel %vm255_vm0, %v392_v6, 0.0  ;;  %v421_v1 = vadd.f32 %v420_v34, %v419_v33 }
  0x72   : > { %v664_v18 = vpop.eup %663  ;;  %v341_v19 = vsel %vm255_vm0, %v662_v8, 0.0  ;;  %v355_v20 = vadd.f32 %v354_v13, %v353_v5  ;;  %v394_v15 = vsel %vm378_vm13, %v1018_v16, 0.0  ;;  %v422_v52 = vsel %vm255_vm0, %v393_v38, 0.0 }
  0x73   : > { %v666_v26 = vpop.eup %665  ;;  %v342_v10 = vadd.f32 %v341_v19, %v340_v12  ;;  %v356_v27 = vsel %vm255_vm0, %v664_v18, 0.0  ;;  %vm380_vm15 = vcmp.eq.s32.totalorder %v1086_v60, 6  ;;  %v395_v55 = vsel %vm379_vm14, %v1021_v17, 0.0 }
  0x74   : > { %v668_v30 = vpop.eup %667  ;;  %v343_v31 = vsel %vm255_vm0, %v666_v26, 0.0  ;;  %v357_v32 = vadd.f32 %v356_v27, %v355_v20  ;;  %vm381_vm3 = vcmp.eq.s32.totalorder %v1095_v7, 6  ;;  %v408_v3 = vadd.f32 %v407_v48, %v406_v40 }
  0x75   : > { %v670_v35 = vpop.eup %669  ;;  %v344_v36 = vadd.f32 %v343_v31, %v342_v10  ;;  %v358_v37 = vsel %vm255_vm0, %v668_v30, 0.0  ;;  %v409_v57 = vsel %vm255_vm0, %v394_v15, 0.0  ;;  %v423_v58 = vadd.f32 %v422_v52, %v421_v1 }
  0x76   : > { %v672_v0 = vpop.eup %671  ;;  %v345_v39 = vsel %vm255_vm0, %v670_v35, 0.0  ;;  %v359_v2 = vadd.f32 %v358_v37, %v357_v32  ;;  %v396_v16 = vsel %vm380_vm15, %v1028_v22, 0.0  ;;  %v424_v4 = vsel %vm255_vm0, %v395_v55, 0.0 }
  0x77   : > { %v674_v41 = vpop.eup %673  ;;  %v346_v42 = vadd.f32 %v345_v39, %v344_v36  ;;  %v360_v43 = vsel %vm255_vm0, %v672_v0, 0.0  ;;  %vm382_vm4 = vcmp.eq.s32.totalorder %v1086_v60, 7  ;;  %v397_v59 = vsel %vm381_vm3, %v1031_v23, 0.0 }
  0x78   : > { %v676_v49 = vpop.eup %675  ;;  %v347_v50 = vsel %vm255_vm0, %v674_v41, 0.0  ;;  %v361_v51 = vadd.f32 %v360_v43, %v359_v2  ;;  %vm383_vm5 = vcmp.eq.s32.totalorder %v1095_v7, 7  ;;  %v410_v17 = vadd.f32 %v409_v57, %v408_v3 }
  0x79   : > { %v348_v53 = vadd.f32 %v347_v50, %v346_v42  ;;  %v362_v54 = vsel %vm255_vm0, %v676_v49, 0.0  ;;  %v411_v61 = vsel %vm255_vm0, %v396_v16, 0.0  ;;  %v425_v62 = vadd.f32 %v424_v4, %v423_v58 }
  0x7a   : > { %v363_v56 = vadd.f32 %v362_v54, %v361_v51  ;;  %v398_v5 = vsel %vm382_vm4, %v1034_v24, 0.0  ;;  %v426_v63 = vsel %vm255_vm0, %v397_v59, 0.0  ;;  %v399_v22 = vsel %vm383_vm5, %v1043_v29, 0.0 }
  0x7b   : > { %677 = vlog2.f32 %v348_v53  ;;  %v412_v6 = vadd.f32 %v411_v61, %v410_v17  ;;  %v413_v8 = vsel %vm255_vm0, %v398_v5, 0.0  ;;  %v427_v60 = vadd.f32 %v426_v63, %v425_v62 }
  0x7c   : > { %679 = vlog2.f32 %v363_v56  ;;  %v428_v23 = vsel %vm255_vm0, %v399_v22, 0.0 }
  0x7d   : > { %v414_v13 = vadd.f32 %v413_v8, %v412_v6  ;;  %v429_v14 = vadd.f32 %v428_v23, %v427_v60 }
  0x85   : > { %v678_v12 = vpop.eup %677 }
  0x86   : > { %v680_v7 = vpop.eup %679  ;;  %v431_v9 = vmul.f32 0.6931472, %v678_v12 }
  0x87   : > { %v433_v18 = vmul.f32 0.6931472, %v680_v7 }
  0x88   : > { %v434_v24 = vadd.f32 %v431_v9, %v1055_v44 }
  0x89   : > { %v435_v19 = vadd.f32 %v433_v18, %v1060_v46 }
  0x8a   : > { %v436_v29 = vsub.f32 %v434_v24, %v414_v13 }
  0x8b   : > { %v437_v20 = vsub.f32 %v435_v19, %v429_v14 }
  0x8c   : > { %v438_v21 = vsel %vm364_vm1, 0.0, %v436_v29 }
  0x8d   : > { %v439_v25 = vsel %vm365_vm2, 0.0, %v437_v20  ;;  %440 = vst.msk [vmem:[%s235_s26] sm:$0xff] %vm255_vm0, %v438_v21 }
  0x8e   : > { %441 = vst.msk [vmem:[%s235_s26 + $0x8] sm:$0xff] %vm255_vm0, %v439_v25 }
  0x8f PF: > { %s18_s14 = sadd.s32 1, %s795_s14   ;;  %s1233_s9 = smov %s779_s10 }
  0x90   : > { %p15_p11 = scmp.ge.s32.totalorder %s18_s14, 4   ;;  %s1234_s10 = smov %s783_s11 }
  0x91   : > { %s1235_s11 = smov %s865_s21  ;;  %s1236_s12 = smov %s791_s13 }
  0x92   : > { %s1237_s13 = smov %s1239_s16  ;;  %17 = sbr.rel (!%p15_p11) target bundleno = 6 (0x6), region = 81 }
  0x99   :  { %472 = vsyncpa [#allocation3], 1 }
  0x9a   :  { %474 = vsyncpa [#allocation3 + $0x1], 1 }
  0x9b   :  { %475 = vsyncpa [#allocation5], 1 }
  0x9c   :  { %477 = vsyncpa [#allocation5 + $0x1], 1 }

// kernel: _lambda_.3
= control target key start
LH: loop header
LB: loop body
LE: loop exit
PB: predicated region body
PF: predicated region fallthrough
CT: control target
= control target key end

     0   :  { %s644_s9 = smov 0   ;;  %s646_s10 = smov 0   ;;  %s914_s0 = inlined_call_operand.vmem [shape: f32[2,8,16,16], index: 0, kind: input, shape index: {}]   ;;  %s915_s1 = inlined_call_operand.vmem [shape: s32[2,16,16], index: 1, kind: input, shape index: {}]   ;;  %s916_s2 = inlined_call_operand.vmem [shape: f32[2,16,16], index: 2, kind: output, shape index: {}]  }
   0x1   :  { %s648_s11 = smov 0  }
   0x2 LB: > { %s24_s12 = sadd.s32 1, %s623_s10  ;;  %p533_p0 = scmp.ge.s32.totalorder %s627_s11, 1  ;;  %s627_s11 = sphi %s648_s11, %s12_s11   ;;  %s623_s10 = sphi %s646_s10, %s918_s10   ;;  %s619_s9 = sphi %s644_s9, %s917_s9  }
   0x3   : > { %p26_p1 = scmp.ge.s32.totalorder %s24_s12, 2  ;;  %p150_p2 = scmp.lt.s32.totalorder %s627_s11, 3 }
   0x5   : > { %s920_s12 = smov (%p26_p1, %s24_s12), 0  ;;  %p151_p3 = pnand %p533_p0, %p150_p2 }
   0x6   : > { %p190_p4 = scmp.lt.s32.totalorder (!%p151_p3), %s619_s9, 1  ;;  %vm237_vm0 = vcmask (!%p151_p3), 130048  }
   0x7   : > { %154 = sbr.rel (%p151_p3) target bundleno = 81 (0x51), region = 28 }
   0xe   : > { %s922_s9 = smov (!%p190_p4, %s619_s9), 1 }
   0xf   : > { %s542_s13 = sshll.u32 %s922_s9, 7  ;;  %s543_s17 = sshll.u32 %s922_s9, 4 }
  0x10   : > { %s668_s16 = scalar_lea.vmem %s914_s0, %s542_s13  ;;  %s207_s20 = scalar_lea.vmem %s915_s1, %s543_s17 }
  0x11   : > { %v671_v0 = vld [vmem:[%s668_s16] sm:$0xff]  ;;  %v674_v1 = vld [vmem:[%s668_s16 + $0x8] sm:$0xff]  ;;  %v677_v2 = vld [vmem:[%s668_s16 + $0x10] sm:$0xff]  ;;  %s217_s23 = scalar_lea.vmem %s916_s2, %s543_s17 }
  0x12   : > { %v680_v3 = vld [vmem:[%s668_s16 + $0x18] sm:$0xff]  ;;  %v683_v4 = vld [vmem:[%s668_s16 + $0x20] sm:$0xff]  ;;  %v686_v5 = vld [vmem:[%s668_s16 + $0x28] sm:$0xff]  ;;  %v238_v6 = vsel %vm237_vm0, %v671_v0, -inf  ;;  %v239_v7 = vsel %vm237_vm0, %v677_v2, -inf  ;;  %v253_v8 = vsel %vm237_vm0, %v674_v1, -inf }
  0x13   : > { %v695_v9 = vld [vmem:[%s668_s16 + $0x30] sm:$0xff]  ;;  %v698_v10 = vld [vmem:[%s668_s16 + $0x38] sm:$0xff]  ;;  %v701_v11 = vld [vmem:[%s668_s16 + $0x40] sm:$0xff]  ;;  %v240_v12 = vsel %vm237_vm0, %v683_v4, -inf  ;;  %v254_v13 = vsel %vm237_vm0, %v680_v3, -inf  ;;  %v255_v14 = vsel %vm237_vm0, %v686_v5, -inf }
  0x14   : > { %v710_v15 = vld [vmem:[%s668_s16 + $0x48] sm:$0xff]  ;;  %v713_v16 = vld [vmem:[%s668_s16 + $0x50] sm:$0xff]  ;;  %v716_v17 = vld [vmem:[%s668_s16 + $0x58] sm:$0xff]  ;;  %v241_v18 = vmax.f32 %v238_v6, %v240_v12  ;;  %v242_v19 = vsel %vm237_vm0, %v695_v9, -inf  ;;  %v244_v20 = vsel %vm237_vm0, %v701_v11, -inf  ;;  %v256_v21 = vmax.f32 %v253_v8, %v255_v14 }
  0x15   : > { %v723_v22 = vld [vmem:[%s668_s16 + $0x60] sm:$0xff]  ;;  %v726_v23 = vld [vmem:[%s668_s16 + $0x68] sm:$0xff]  ;;  %v729_v24 = vld [vmem:[%s668_s16 + $0x70] sm:$0xff]  ;;  %v243_v25 = vmax.f32 %v239_v7, %v242_v19  ;;  %v246_v26 = vsel %vm237_vm0, %v713_v16, -inf  ;;  %v257_v27 = vsel %vm237_vm0, %v698_v10, -inf  ;;  %v259_v28 = vsel %vm237_vm0, %v710_v15, -inf }
  0x16   : > { %v739_v29 = vld [vmem:[%s668_s16 + $0x78] sm:$0xff]  ;;  %v245_v30 = vmax.f32 %v241_v18, %v244_v20  ;;  %v248_v31 = vsel %vm237_vm0, %v723_v22, -inf  ;;  %v250_v32 = vsel %vm237_vm0, %v729_v24, -inf  ;;  %v258_v33 = vmax.f32 %v254_v13, %v257_v27  ;;  %v758_v45 = vld [vmem:[%s207_s20] sm:$0xff]  ;;  %v762_v47 = vld [vmem:[%s207_s20 + $0x8] sm:$0xff] }
  0x17   : > { %v247_v34 = vmax.f32 %v243_v25, %v246_v26  ;;  %v260_v35 = vmax.f32 %v256_v21, %v259_v28  ;;  %v261_v36 = vsel %vm237_vm0, %v716_v17, -inf  ;;  %v263_v37 = vsel %vm237_vm0, %v726_v23, -inf }
  0x18   : > { %v249_v38 = vmax.f32 %v245_v30, %v248_v31  ;;  %v262_v39 = vmax.f32 %v258_v33, %v261_v36  ;;  %v265_v40 = vsel %vm237_vm0, %v739_v29, -inf  ;;  %vm346_vm1 = vcmp.eq.s32.totalorder %v758_v45, 255 }
  0x19   : > { %v251_v41 = vmax.f32 %v247_v34, %v250_v32  ;;  %v264_v42 = vmax.f32 %v260_v35, %v263_v37  ;;  %vm347_vm2 = vcmp.eq.s32.totalorder %v762_v47, 255  ;;  %v785_v60 = vsel %vm346_vm1, 0, %v758_v45 }
  0x1a   : > { %v266_v43 = vmax.f32 %v262_v39, %v265_v40  ;;  %v794_v7 = vsel %vm347_vm2, 0, %v762_v47  ;;  %vm350_vm3 = vcmp.eq.s32.totalorder %v785_v60, 0  ;;  %vm352_vm4 = vcmp.eq.s32.totalorder %v785_v60, 1 }
  0x1b   : > { %v756_v44 = vmax.f32 %v249_v38, %v251_v41  ;;  %vm351_vm5 = vcmp.eq.s32.totalorder %v794_v7, 0  ;;  %vm353_vm6 = vcmp.eq.s32.totalorder %v794_v7, 1  ;;  %vm354_vm7 = vcmp.eq.s32.totalorder %v785_v60, 2 }
  0x1c   : > { %v760_v46 = vmax.f32 %v264_v42, %v266_v43  ;;  %vm355_vm8 = vcmp.eq.s32.totalorder %v794_v7, 2  ;;  %vm356_vm9 = vcmp.eq.s32.totalorder %v785_v60, 3  ;;  %vm357_vm10 = vcmp.eq.s32.totalorder %v794_v7, 3 }
  0x1d   : > { %v268_v48 = vsub.f32 %v671_v0, %v756_v44  ;;  %v270_v49 = vsub.f32 %v677_v2, %v756_v44  ;;  %v272_v52 = vsub.f32 %v683_v4, %v756_v44  ;;  %v274_v54 = vsub.f32 %v695_v9, %v756_v44 }
  0x1e   : > { %v269_v50 = vsub.f32 %v674_v1, %v760_v46  ;;  %v271_v51 = vsub.f32 %v680_v3, %v760_v46  ;;  %v273_v53 = vsub.f32 %v686_v5, %v760_v46  ;;  %v275_v58 = vsub.f32 %v698_v10, %v760_v46 }
  0x1f   : > { %v284_v55 = vmul.f32 1.442695, %v268_v48  ;;  %v288_v57 = vmul.f32 1.442695, %v270_v49  ;;  %v276_v61 = vsub.f32 %v701_v11, %v756_v44  ;;  %v292_v62 = vmul.f32 1.442695, %v272_v52 }
  0x20   : > { %v286_v56 = vmul.f32 1.442695, %v269_v50  ;;  %v290_v59 = vmul.f32 1.442695, %v271_v51  ;;  %v277_v63 = vsub.f32 %v710_v15, %v760_v46  ;;  %v294_v6 = vmul.f32 1.442695, %v273_v53 }
  0x21   : > { %569 = vpow2.f32 %v284_v55  ;;  %v278_v8 = vsub.f32 %v713_v16, %v756_v44  ;;  %v296_v12 = vmul.f32 1.442695, %v274_v54  ;;  %v279_v13 = vsub.f32 %v716_v17, %v760_v46 }
  0x22   : > { %571 = vpow2.f32 %v286_v56  ;;  %v298_v14 = vmul.f32 1.442695, %v275_v58  ;;  %v280_v18 = vsub.f32 %v723_v22, %v756_v44  ;;  %v300_v19 = vmul.f32 1.442695, %v276_v61 }
  0x23   : > { %573 = vpow2.f32 %v288_v57  ;;  %v281_v20 = vsub.f32 %v726_v23, %v760_v46  ;;  %v302_v21 = vmul.f32 1.442695, %v277_v63  ;;  %v282_v25 = vsub.f32 %v729_v24, %v756_v44 }
  0x24   : > { %575 = vpow2.f32 %v290_v59  ;;  %v283_v26 = vsub.f32 %v739_v29, %v760_v46  ;;  %v304_v27 = vmul.f32 1.442695, %v278_v8  ;;  %v306_v28 = vmul.f32 1.442695, %v279_v13 }
  0x25   : > { %577 = vpow2.f32 %v292_v62  ;;  %v308_v30 = vmul.f32 1.442695, %v280_v18  ;;  %v310_v31 = vmul.f32 1.442695, %v281_v20  ;;  %v366_v32 = vsel %vm350_vm3, %v671_v0, 0.0 }
  0x26   : > { %579 = vpow2.f32 %v294_v6  ;;  %v368_v33 = vsel %vm352_vm4, %v677_v2, 0.0  ;;  %v312_v35 = vmul.f32 1.442695, %v282_v25  ;;  %v314_v36 = vmul.f32 1.442695, %v283_v26 }
  0x27   : > { %581 = vpow2.f32 %v296_v12  ;;  %vm358_vm11 = vcmp.eq.s32.totalorder %v785_v60, 4  ;;  %vm359_vm12 = vcmp.eq.s32.totalorder %v794_v7, 4  ;;  %v367_v0 = vsel %vm351_vm5, %v674_v1, 0.0 }
  0x28   : > { %583 = vpow2.f32 %v298_v14  ;;  %v382_v40 = vsel %vm237_vm0, %v366_v32, 0.0  ;;  %v383_v41 = vsel %vm237_vm0, %v368_v33, 0.0  ;;  %v369_v48 = vsel %vm353_vm6, %v680_v3, 0.0 }
  0x29   : > { %585 = vpow2.f32 %v300_v19  ;;  %v370_v1 = vsel %vm354_vm7, %v683_v4, 0.0  ;;  %v371_v52 = vsel %vm355_vm8, %v686_v5, 0.0  ;;  %v384_v56 = vadd.f32 %v383_v41, %v382_v40 }
  0x2a   : > { %587 = vpow2.f32 %v302_v21  ;;  %v372_v4 = vsel %vm356_vm9, %v695_v9, 0.0  ;;  %v385_v59 = vsel %vm237_vm0, %v370_v1, 0.0  ;;  %v373_v63 = vsel %vm357_vm10, %v698_v10, 0.0 }
  0x2b   : > { %v570_v34 = vpop.eup %569  ;;  %589 = vpow2.f32 %v304_v27  ;;  %v374_v6 = vsel %vm358_vm11, %v701_v11, 0.0  ;;  %v397_v9 = vsel %vm237_vm0, %v367_v0, 0.0  ;;  %v398_v14 = vsel %vm237_vm0, %v369_v48, 0.0 }
  0x2c   : > { %v572_v37 = vpop.eup %571  ;;  %591 = vpow2.f32 %v306_v28  ;;  %v316_v38 = vsel %vm237_vm0, %v570_v34, 0.0  ;;  %v386_v21 = vadd.f32 %v385_v59, %v384_v56  ;;  %v399_v25 = vadd.f32 %v398_v14, %v397_v9 }
  0x2d   : > { %v574_v39 = vpop.eup %573  ;;  %593 = vpow2.f32 %v308_v30  ;;  %v331_v2 = vsel %vm237_vm0, %v572_v37, 0.0  ;;  %v387_v11 = vsel %vm237_vm0, %v372_v4, 0.0  ;;  %v400_v28 = vsel %vm237_vm0, %v371_v52, 0.0 }
  0x2e   : > { %v576_v42 = vpop.eup %575  ;;  %595 = vpow2.f32 %v310_v31  ;;  %v317_v43 = vsel %vm237_vm0, %v574_v39, 0.0  ;;  %v401_v33 = vadd.f32 %v400_v28, %v399_v25  ;;  %v402_v34 = vsel %vm237_vm0, %v373_v63, 0.0 }
  0x2f   : > { %v578_v49 = vpop.eup %577  ;;  %597 = vpow2.f32 %v312_v35  ;;  %v318_v50 = vadd.f32 %v317_v43, %v316_v38  ;;  %v332_v51 = vsel %vm237_vm0, %v576_v42, 0.0  ;;  %vm360_vm13 = vcmp.eq.s32.totalorder %v785_v60, 5 }
  0x30   : > { %v580_v53 = vpop.eup %579  ;;  %599 = vpow2.f32 %v314_v36  ;;  %v319_v54 = vsel %vm237_vm0, %v578_v49, 0.0  ;;  %v333_v55 = vadd.f32 %v332_v51, %v331_v2  ;;  %v375_v38 = vsel %vm359_vm12, %v710_v15, 0.0 }
  0x31   : > { %v582_v3 = vpop.eup %581  ;;  %v320_v57 = vadd.f32 %v319_v54, %v318_v50  ;;  %v334_v58 = vsel %vm237_vm0, %v580_v53, 0.0  ;;  %vm361_vm14 = vcmp.eq.s32.totalorder %v794_v7, 5  ;;  %v388_v40 = vadd.f32 %v387_v11, %v386_v21 }
  0x32   : > { %v584_v61 = vpop.eup %583  ;;  %v321_v62 = vsel %vm237_vm0, %v582_v3, 0.0  ;;  %v335_v5 = vadd.f32 %v334_v58, %v333_v55  ;;  %v389_v48 = vsel %vm237_vm0, %v374_v6, 0.0  ;;  %v403_v1 = vadd.f32 %v402_v34, %v401_v33 }
  0x33   : > { %v586_v8 = vpop.eup %585  ;;  %v322_v12 = vadd.f32 %v321_v62, %v320_v57  ;;  %v336_v13 = vsel %vm237_vm0, %v584_v61, 0.0  ;;  %v376_v15 = vsel %vm360_vm13, %v713_v16, 0.0  ;;  %v404_v52 = vsel %vm237_vm0, %v375_v38, 0.0 }
  0x34   : > { %v588_v18 = vpop.eup %587  ;;  %v323_v19 = vsel %vm237_vm0, %v586_v8, 0.0  ;;  %v337_v20 = vadd.f32 %v336_v13, %v335_v5  ;;  %vm362_vm15 = vcmp.eq.s32.totalorder %v785_v60, 6  ;;  %v377_v55 = vsel %vm361_vm14, %v716_v17, 0.0 }
  0x35   : > { %v590_v26 = vpop.eup %589  ;;  %v324_v10 = vadd.f32 %v323_v19, %v322_v12  ;;  %v338_v27 = vsel %vm237_vm0, %v588_v18, 0.0  ;;  %vm363_vm3 = vcmp.eq.s32.totalorder %v794_v7, 6  ;;  %v390_v3 = vadd.f32 %v389_v48, %v388_v40 }
  0x36   : > { %v592_v30 = vpop.eup %591  ;;  %v325_v31 = vsel %vm237_vm0, %v590_v26, 0.0  ;;  %v339_v32 = vadd.f32 %v338_v27, %v337_v20  ;;  %v391_v57 = vsel %vm237_vm0, %v376_v15, 0.0  ;;  %v405_v58 = vadd.f32 %v404_v52, %v403_v1 }
  0x37   : > { %v594_v35 = vpop.eup %593  ;;  %v326_v36 = vadd.f32 %v325_v31, %v324_v10  ;;  %v340_v37 = vsel %vm237_vm0, %v592_v30, 0.0  ;;  %v378_v4 = vsel %vm362_vm15, %v723_v22, 0.0  ;;  %v406_v16 = vsel %vm237_vm0, %v377_v55, 0.0 }
  0x38   : > { %v596_v0 = vpop.eup %595  ;;  %v327_v39 = vsel %vm237_vm0, %v594_v35, 0.0  ;;  %v341_v2 = vadd.f32 %v340_v37, %v339_v32  ;;  %vm364_vm4 = vcmp.eq.s32.totalorder %v785_v60, 7  ;;  %v379_v59 = vsel %vm363_vm3, %v726_v23, 0.0 }
  0x39   : > { %v598_v41 = vpop.eup %597  ;;  %v328_v42 = vadd.f32 %v327_v39, %v326_v36  ;;  %v342_v43 = vsel %vm237_vm0, %v596_v0, 0.0  ;;  %vm365_vm5 = vcmp.eq.s32.totalorder %v794_v7, 7  ;;  %v392_v17 = vadd.f32 %v391_v57, %v390_v3 }
  0x3a   : > { %v600_v49 = vpop.eup %599  ;;  %v329_v50 = vsel %vm237_vm0, %v598_v41, 0.0  ;;  %v343_v51 = vadd.f32 %v342_v43, %v341_v2  ;;  %v393_v61 = vsel %vm237_vm0, %v378_v4, 0.0  ;;  %v407_v62 = vadd.f32 %v406_v16, %v405_v58 }
  0x3b   : > { %v330_v53 = vadd.f32 %v329_v50, %v328_v42  ;;  %v344_v54 = vsel %vm237_vm0, %v600_v49, 0.0  ;;  %v380_v5 = vsel %vm364_vm4, %v729_v24, 0.0  ;;  %v408_v63 = vsel %vm237_vm0, %v379_v59, 0.0 }
  0x3c   : > { %v345_v56 = vadd.f32 %v344_v54, %v343_v51  ;;  %v381_v22 = vsel %vm365_vm5, %v739_v29, 0.0  ;;  %v394_v6 = vadd.f32 %v393_v61, %v392_v17  ;;  %v395_v8 = vsel %vm237_vm0, %v380_v5, 0.0 }
  0x3d   : > { %601 = vlog2.f32 %v330_v53  ;;  %v409_v12 = vadd.f32 %v408_v63, %v407_v62  ;;  %v410_v60 = vsel %vm237_vm0, %v381_v22, 0.0 }
  0x3e   : > { %603 = vlog2.f32 %v345_v56  ;;  %v396_v7 = vadd.f32 %v395_v8, %v394_v6 }
  0x3f   : > { %v411_v14 = vadd.f32 %v410_v60, %v409_v12 }
  0x47   : > { %v602_v23 = vpop.eup %601 }
  0x48   : > { %v604_v13 = vpop.eup %603  ;;  %v413_v9 = vmul.f32 0.6931472, %v602_v23 }
  0x49   : > { %v415_v18 = vmul.f32 0.6931472, %v604_v13 }
  0x4a   : > { %v416_v19 = vadd.f32 %v413_v9, %v756_v44 }
  0x4b   : > { %v417_v24 = vadd.f32 %v415_v18, %v760_v46 }
  0x4c   : > { %v418_v29 = vsub.f32 %v416_v19, %v396_v7 }
  0x4d   : > { %v419_v20 = vsub.f32 %v417_v24, %v411_v14 }
  0x4e   : > { %v420_v21 = vsel %vm346_vm1, 0.0, %v418_v29 }
  0x4f   : > { %v421_v25 = vsel %vm347_vm2, 0.0, %v419_v20  ;;  %422 = vst.msk [vmem:[%s217_s23] sm:$0xff] %vm237_vm0, %v420_v21 }
  0x50   : > { %423 = vst.msk [vmem:[%s217_s23 + $0x8] sm:$0xff] %vm237_vm0, %v421_v25 }
  0x51 PF: > { %s12_s11 = sadd.s32 1, %s627_s11   ;;  %s917_s9 = smov %s623_s10 }
  0x52   : > { %p9_p5 = scmp.ge.s32.totalorder %s12_s11, 4   ;;  %s918_s10 = smov %s920_s12 }
  0x54   :  { %11 = sbr.rel (!%p9_p5) target bundleno = 2 (0x2), region = 61 }

</bundles_post_ra>
